<compile_context>
chip_gen: v5e
topology: v5e:2x2
jax: 0.10.0
libtpu: 0.0.40
codegen_flags: <defaults>
</compile_context>

<pallas_src>
import jax
import jax.numpy as jnp
from jax import lax
from jax.experimental import pallas as pl
from jax.experimental.pallas import tpu as pltpu

# ---------------------------------------------------------------------------
# Sizes (stand-in model hyper-parameters)
# ---------------------------------------------------------------------------
FEATURE_DIM = 40            # resnet.fc.out_features; 40//10=4, 40//5=8
CONV_CH = 16                # conv stand-in output channels
IMG = 16
IN_CH = 3
K_RAW = 9 * IN_CH           # 27 im2col columns
K_PAD = 32                  # padded K; col 27 = 1.0 (bias carrier), 28..31 = 0
LANE = 128                  # lane-dense padded width (conv channels / feat / pre)
DEC_OUT = 3 * IMG * IMG     # 768 = 6 * 128 (already lane-dense)
H1 = FEATURE_DIM // 10
H2 = FEATURE_DIM // 5
LEAKY_SLOPE = 0.01          # torch.nn.LeakyReLU default
CHUNK = 64                  # conv row-tile (64x128 f32 = 8 vregs live)


# ---------------------------------------------------------------------------
# Single fused Pallas kernel (per image): conv + relu + pool + projector + decoder
# ---------------------------------------------------------------------------
def fused_network_kernel(patches_ref, conv_w_ref, p1_ref, p2_ref, p3_ref,
                         dec_ref, pre_ref, recon_ref):
    hw = patches_ref.shape[1]
    num_chunks = hw // CHUNK
    conv_w = conv_w_ref[...]                                   # (K_PAD, 128) bf16

    # (1)+(2) conv3x3 (im2col matmul, bf16 operands / f32 acc) + ReLU + pool,
    #         fused and accumulated over 64-row chunks so the (HW,128) f32
    #         conv activation never materializes.  Column 127 of conv_w is a
    #         constant-1 carrier channel (feeds all downstream biases); row
    #         K_RAW carries the conv bias via the ones-column of `patches`.
    def body(c, acc):
        start = pl.multiple_of(c * CHUNK, CHUNK)
        chunk = patches_ref[0, pl.ds(start, CHUNK), :]         # (CHUNK, 32) bf16
        conv = jnp.dot(chunk, conv_w, preferred_element_type=jnp.float32)
        conv = jnp.maximum(conv, 0.0)                          # ReLU (f32 VPU)
        return acc + jnp.sum(conv, axis=0, keepdims=True)      # XLU reduce

    acc0 = jnp.zeros((1, LANE), jnp.float32)
    pooled = lax.fori_loop(0, num_chunks, body, acc0, unroll=True)
    pooled = pooled * (1.0 / hw)                               # GAP; carrier stays 1.0
    pooled_b = pooled.astype(jnp.bfloat16)

    # (3)+(4) predict_projector.  resnet.fc is pre-folded into p1 (and dec),
    #         so pooled feeds the projector directly.  LeakyReLU in f32.
    y = jnp.dot(pooled_b, p1_ref[...], preferred_element_type=jnp.float32)
    y = jnp.where(y >= 0.0, y, LEAKY_SLOPE * y)
    y = jnp.dot(y.astype(jnp.bfloat16), p2_ref[...],
                preferred_element_type=jnp.float32)
    y = jnp.where(y >= 0.0, y, LEAKY_SLOPE * y)
    pre = jnp.dot(y.astype(jnp.bfloat16), p3_ref[...],
                  preferred_element_type=jnp.float32)          # (1, 128)
    pre_ref[0] = pre

    # (5) decoder: Linear(feat -> 3*H*W) with fc pre-folded, lane-dense output.
    recon_ref[0] = jnp.dot(pooled_b, dec_ref[...],
                           preferred_element_type=jnp.float32)  # (1, 768)


# ---------------------------------------------------------------------------
# Parameter init (deterministic, synthetic)
# ---------------------------------------------------------------------------
def init_params(key):
    ks = jax.random.split(key, 8)

    def w(k, shape, scale):
        return jax.random.normal(k, shape, dtype=jnp.float32) * scale

    return {
        # resnet stand-in
        "conv_w": w(ks[0], (K_RAW, CONV_CH), 0.1),
        "conv_b": jnp.zeros((CONV_CH,), jnp.float32),
        "fc_w":   w(ks[1], (CONV_CH, FEATURE_DIM), 0.1),
        "fc_b":   w(ks[2], (FEATURE_DIM,), 0.01),
        # predict_projector
        "p1_w": w(ks[3], (FEATURE_DIM, H1), 0.1), "p1_b": jnp.zeros((H1,), jnp.float32),
        "p2_w": w(ks[4], (H1, H2), 0.1),          "p2_b": jnp.zeros((H2,), jnp.float32),
        "p3_w": w(ks[5], (H2, 1), 0.1),           "p3_b": jnp.zeros((1,), jnp.float32),
        # decoder stand-in
        "dec_w": w(ks[6], (FEATURE_DIM, DEC_OUT), 0.05),
        "dec_b": jnp.zeros((DEC_OUT,), jnp.float32),
    }


# ---------------------------------------------------------------------------
# Bias folding, fc folding, lane padding, bf16 packing (once, outside jit)
# ---------------------------------------------------------------------------
def pack_params(p):
    conv_w = jnp.zeros((K_PAD, LANE), jnp.float32)
    conv_w = conv_w.at[:K_RAW, :CONV_CH].set(p["conv_w"])
    conv_w = conv_w.at[K_RAW, :CONV_CH].set(p["conv_b"])       # bias row (x ones-col)
    conv_w = conv_w.at[K_RAW, LANE - 1].set(1.0)               # constant-1 channel

    fc_w = jnp.zeros((LANE, LANE), jnp.float32)
    fc_w = fc_w.at[:CONV_CH, :FEATURE_DIM].set(p["fc_w"])
    fc_w = fc_w.at[LANE - 1, :FEATURE_DIM].set(p["fc_b"])
    fc_w = fc_w.at[LANE - 1, LANE - 1].set(1.0)                # carry the 1 forward

    p1 = jnp.zeros((LANE, LANE), jnp.float32)
    p1 = p1.at[:FEATURE_DIM, :H1].set(p["p1_w"])
    p1 = p1.at[LANE - 1, :H1].set(p["p1_b"])
    p1 = p1.at[LANE - 1, LANE - 1].set(1.0)

    p2 = jnp.zeros((LANE, LANE), jnp.float32)
    p2 = p2.at[:H1, :H2].set(p["p2_w"])
    p2 = p2.at[LANE - 1, :H2].set(p["p2_b"])
    p2 = p2.at[LANE - 1, LANE - 1].set(1.0)

    p3 = jnp.zeros((LANE, LANE), jnp.float32)
    p3 = p3.at[:H2, :1].set(p["p3_w"])
    p3 = p3.at[LANE - 1, :1].set(p["p3_b"])

    dec = jnp.zeros((LANE, DEC_OUT), jnp.float32)
    dec = dec.at[:FEATURE_DIM, :].set(p["dec_w"])
    dec = dec.at[LANE - 1, :].set(p["dec_b"])

    # Fold resnet.fc into the first projector layer and the decoder (linear
    # composition; the carrier-1 column composes to exactly 1.0).
    fused_p1 = fc_w @ p1
    fused_dec = fc_w @ dec

    return {  # all weights bf16 MXU operands (f32 accumulation in-kernel)
        "conv_w": conv_w.astype(jnp.bfloat16),
        "p1_w": fused_p1.astype(jnp.bfloat16),
        "p2_w": p2.astype(jnp.bfloat16),
        "p3_w": p3.astype(jnp.bfloat16),
        "dec_w": fused_dec.astype(jnp.bfloat16),
    }


# ---------------------------------------------------------------------------
# Forward pass (im2col glue in JAX, everything else in ONE Pallas kernel)
# ---------------------------------------------------------------------------
def network_forward(packed, x_nchw):
    n, c, h, w = x_nchw.shape
    hw = h * w

    # --- im2col glue: NCHW -> NHWC -> 3x3 patches, K padded to 32 with a
    #     ones-column (conv-bias carrier) and zero columns -------------------
    # TODO(synk): real pretrained Conv2d weights would need a (in_ch, kh, kw)
    #             permute of conv_w to match this [(kh,kw)-major, ch-minor] order.
    # TODO(synk): for large N/H*W, move im2col into the kernel (shifted slices
    #             of the padded NHWC image per row-tile) to avoid the 9x
    #             patches amplification in HBM.
    x = jnp.transpose(x_nchw, (0, 2, 3, 1))
    xp = jnp.pad(x, ((0, 0), (1, 1), (1, 1), (0, 0)))
    cols = [xp[:, kh:kh + h, kw:kw + w, :] for kh in range(3) for kw in range(3)]
    patches = jnp.concatenate(cols, axis=-1).reshape(n, hw, 9 * c)     # (N, HW, 27)
    patches_aug = jnp.concatenate(
        [patches,
         jnp.ones((n, hw, 1), jnp.float32),                            # bias carrier
         jnp.zeros((n, hw, K_PAD - 9 * c - 1), jnp.float32)], axis=-1
    ).astype(jnp.bfloat16)                                             # (N, HW, 32)

    pre_pad, recon_flat = pl.pallas_call(
        fused_network_kernel,
        out_shape=(
            jax.ShapeDtypeStruct((n, 1, LANE), jnp.float32),     # pre, lane-dense slab
            jax.ShapeDtypeStruct((n, 1, DEC_OUT), jnp.float32),  # recon, 6*128 lanes
        ),
        grid=(n,),
        in_specs=[
            pl.BlockSpec((1, hw, K_PAD), lambda i: (i, 0, 0)),
            pl.BlockSpec((K_PAD, LANE), lambda i: (0, 0)),
            pl.BlockSpec((LANE, LANE), lambda i: (0, 0)),
            pl.BlockSpec((LANE, LANE), lambda i: (0, 0)),
            pl.BlockSpec((LANE, LANE), lambda i: (0, 0)),
            pl.BlockSpec((LANE, DEC_OUT), lambda i: (0, 0)),
        ],
        out_specs=(
            pl.BlockSpec((1, 1, LANE), lambda i: (i, 0, 0)),
            pl.BlockSpec((1, 1, DEC_OUT), lambda i: (i, 0, 0)),
        ),
        compiler_params=pltpu.CompilerParams(
            dimension_semantics=("parallel",)),   # v7x: one image per TensorCore
    )(patches_aug, packed["conv_w"], packed["p1_w"], packed["p2_w"],
      packed["p3_w"], packed["dec_w"])

    pre = pre_pad[:, 0, :1]                       # (N, 1)
    recon = recon_flat.reshape(n, 3, h, w)        # NCHW, like PyTorch
    return pre, recon


# ---------------------------------------------------------------------------
if __name__ == "__main__":
    key = jax.random.PRNGKey(0)
    k_params, k_x = jax.random.split(key)

    params = init_params(k_params)
    packed = pack_params(params)                  # fc/bias folding once, outside jit
    x = jax.random.normal(k_x, (2, IN_CH, IMG, IMG), dtype=jnp.float32)   # NCHW

    fwd = jax.jit(network_forward)
    pre, recon = fwd(packed, x)
    jax.block_until_ready((pre, recon))

    assert pre.shape == (2, 1), pre.shape
    assert recon.shape == (2, 3, IMG, IMG), recon.shape
    print("KERNEL_OK")
</pallas_src>

<mosaic_0001>
module attributes {stable_mosaic.version = 11 : i64} {
  func.func @fused_network_kernel(%arg0: i32, %arg1: memref<1x256x32xbf16, #tpu.memory_space<vmem>>, %arg2: memref<32x128xbf16, #tpu.memory_space<vmem>>, %arg3: memref<128x128xbf16, #tpu.memory_space<vmem>>, %arg4: memref<128x128xbf16, #tpu.memory_space<vmem>>, %arg5: memref<128x128xbf16, #tpu.memory_space<vmem>>, %arg6: memref<128x768xbf16, #tpu.memory_space<vmem>>, %arg7: memref<1x1x128xf32, #tpu.memory_space<vmem>>, %arg8: memref<1x1x768xf32, #tpu.memory_space<vmem>>) attributes {dimension_semantics = [#tpu.dimension_semantics<parallel>], iteration_bounds = array<i64: 2>, scalar_prefetch = 0 : i64, scratch_operands = 0 : i64, tpu.core_type = #tpu.core_type<tc>, window_params = [{transform_indices = @transform_0, window_bounds = array<i64: 1, 256, 32>}, {pipeline_mode = #tpu.pipeline_mode<synchronous>, transform_indices = @transform_1, window_bounds = array<i64: 32, 128>}, {pipeline_mode = #tpu.pipeline_mode<synchronous>, transform_indices = @transform_2, window_bounds = array<i64: 128, 128>}, {pipeline_mode = #tpu.pipeline_mode<synchronous>, transform_indices = @transform_3, window_bounds = array<i64: 128, 128>}, {pipeline_mode = #tpu.pipeline_mode<synchronous>, transform_indices = @transform_4, window_bounds = array<i64: 128, 128>}, {pipeline_mode = #tpu.pipeline_mode<synchronous>, transform_indices = @transform_5, window_bounds = array<i64: 128, 768>}, {transform_indices = @transform_6, window_bounds = array<i64: 1, 1, 128>}, {transform_indices = @transform_7, window_bounds = array<i64: 1, 1, 768>}]} {
    %c0 = arith.constant 0 : index
    %c0_0 = arith.constant 0 : index
    %0 = vector.load %arg2[%c0, %c0_0] : memref<32x128xbf16, #tpu.memory_space<vmem>>, vector<32x128xbf16>
    %cst = arith.constant 0.000000e+00 : f32
    %1 = vector.broadcast %cst : f32 to vector<1x128xf32>
    %c0_i32 = arith.constant 0 : i32
    %c64_i32 = arith.constant 64 : i32
    %2 = arith.muli %c0_i32, %c64_i32 : i32
    %3 = tpu.assume_multiple %2, 64 : i32
    %c0_1 = arith.constant 0 : index
    %4 = arith.index_cast %3 : i32 to index
    %c0_2 = arith.constant 0 : index
    %5 = vector.load %arg1[%c0_1, %4, %c0_2] : memref<1x256x32xbf16, #tpu.memory_space<vmem>>, vector<1x64x32xbf16>
    %6 = vector.shape_cast %5 : vector<1x64x32xbf16> to vector<64x32xbf16>
    %cst_3 = arith.constant dense<0.000000e+00> : vector<64x128xf32>
    %7 = tpu.matmul %6, %0, %cst_3 {dimension_numbers = #tpu.dot_dimension_numbers<[1], [0], [0], [1], [0, 0, 1, 1], [], []>} : vector<64x32xbf16>, vector<32x128xbf16>, vector<64x128xf32> -> vector<64x128xf32>
    %cst_4 = arith.constant 0.000000e+00 : f32
    %8 = vector.broadcast %cst_4 : f32 to vector<64x128xf32>
    %9 = arith.maximumf %7, %8 : vector<64x128xf32>
    %cst_5 = arith.constant dense<0.000000e+00> : vector<128xf32>
    %10 = vector.multi_reduction <add>, %9, %cst_5 [0] : vector<64x128xf32> to vector<128xf32>
    %11 = vector.shape_cast %10 : vector<128xf32> to vector<1x128xf32>
    %12 = arith.addf %1, %11 : vector<1x128xf32>
    %c1_i32 = arith.constant 1 : i32
    %c64_i32_6 = arith.constant 64 : i32
    %13 = arith.muli %c1_i32, %c64_i32_6 : i32
    %14 = tpu.assume_multiple %13, 64 : i32
    %c0_7 = arith.constant 0 : index
    %15 = arith.index_cast %14 : i32 to index
    %c0_8 = arith.constant 0 : index
    %16 = vector.load %arg1[%c0_7, %15, %c0_8] : memref<1x256x32xbf16, #tpu.memory_space<vmem>>, vector<1x64x32xbf16>
    %17 = vector.shape_cast %16 : vector<1x64x32xbf16> to vector<64x32xbf16>
    %cst_9 = arith.constant dense<0.000000e+00> : vector<64x128xf32>
    %18 = tpu.matmul %17, %0, %cst_9 {dimension_numbers = #tpu.dot_dimension_numbers<[1], [0], [0], [1], [0, 0, 1, 1], [], []>} : vector<64x32xbf16>, vector<32x128xbf16>, vector<64x128xf32> -> vector<64x128xf32>
    %cst_10 = arith.constant 0.000000e+00 : f32
    %19 = vector.broadcast %cst_10 : f32 to vector<64x128xf32>
    %20 = arith.maximumf %18, %19 : vector<64x128xf32>
    %cst_11 = arith.constant dense<0.000000e+00> : vector<128xf32>
    %21 = vector.multi_reduction <add>, %20, %cst_11 [0] : vector<64x128xf32> to vector<128xf32>
    %22 = vector.shape_cast %21 : vector<128xf32> to vector<1x128xf32>
    %23 = arith.addf %12, %22 : vector<1x128xf32>
    %c2_i32 = arith.constant 2 : i32
    %c64_i32_12 = arith.constant 64 : i32
    %24 = arith.muli %c2_i32, %c64_i32_12 : i32
    %25 = tpu.assume_multiple %24, 64 : i32
    %c0_13 = arith.constant 0 : index
    %26 = arith.index_cast %25 : i32 to index
    %c0_14 = arith.constant 0 : index
    %27 = vector.load %arg1[%c0_13, %26, %c0_14] : memref<1x256x32xbf16, #tpu.memory_space<vmem>>, vector<1x64x32xbf16>
    %28 = vector.shape_cast %27 : vector<1x64x32xbf16> to vector<64x32xbf16>
    %cst_15 = arith.constant dense<0.000000e+00> : vector<64x128xf32>
    %29 = tpu.matmul %28, %0, %cst_15 {dimension_numbers = #tpu.dot_dimension_numbers<[1], [0], [0], [1], [0, 0, 1, 1], [], []>} : vector<64x32xbf16>, vector<32x128xbf16>, vector<64x128xf32> -> vector<64x128xf32>
    %cst_16 = arith.constant 0.000000e+00 : f32
    %30 = vector.broadcast %cst_16 : f32 to vector<64x128xf32>
    %31 = arith.maximumf %29, %30 : vector<64x128xf32>
    %cst_17 = arith.constant dense<0.000000e+00> : vector<128xf32>
    %32 = vector.multi_reduction <add>, %31, %cst_17 [0] : vector<64x128xf32> to vector<128xf32>
    %33 = vector.shape_cast %32 : vector<128xf32> to vector<1x128xf32>
    %34 = arith.addf %23, %33 : vector<1x128xf32>
    %c3_i32 = arith.constant 3 : i32
    %c64_i32_18 = arith.constant 64 : i32
    %35 = arith.muli %c3_i32, %c64_i32_18 : i32
    %36 = tpu.assume_multiple %35, 64 : i32
    %c0_19 = arith.constant 0 : index
    %37 = arith.index_cast %36 : i32 to index
    %c0_20 = arith.constant 0 : index
    %38 = vector.load %arg1[%c0_19, %37, %c0_20] : memref<1x256x32xbf16, #tpu.memory_space<vmem>>, vector<1x64x32xbf16>
    %39 = vector.shape_cast %38 : vector<1x64x32xbf16> to vector<64x32xbf16>
    %cst_21 = arith.constant dense<0.000000e+00> : vector<64x128xf32>
    %40 = tpu.matmul %39, %0, %cst_21 {dimension_numbers = #tpu.dot_dimension_numbers<[1], [0], [0], [1], [0, 0, 1, 1], [], []>} : vector<64x32xbf16>, vector<32x128xbf16>, vector<64x128xf32> -> vector<64x128xf32>
    %cst_22 = arith.constant 0.000000e+00 : f32
    %41 = vector.broadcast %cst_22 : f32 to vector<64x128xf32>
    %42 = arith.maximumf %40, %41 : vector<64x128xf32>
    %cst_23 = arith.constant dense<0.000000e+00> : vector<128xf32>
    %43 = vector.multi_reduction <add>, %42, %cst_23 [0] : vector<64x128xf32> to vector<128xf32>
    %44 = vector.shape_cast %43 : vector<128xf32> to vector<1x128xf32>
    %45 = arith.addf %34, %44 : vector<1x128xf32>
    %c4_i32 = arith.constant 4 : i32
    %cst_24 = arith.constant 3.906250e-03 : f32
    %46 = vector.broadcast %cst_24 : f32 to vector<1x128xf32>
    %47 = arith.mulf %45, %46 : vector<1x128xf32>
    %48 = arith.truncf %47 : vector<1x128xf32> to vector<1x128xbf16>
    %c0_25 = arith.constant 0 : index
    %c0_26 = arith.constant 0 : index
    %49 = vector.load %arg3[%c0_25, %c0_26] : memref<128x128xbf16, #tpu.memory_space<vmem>>, vector<128x128xbf16>
    %cst_27 = arith.constant dense<0.000000e+00> : vector<1x128xf32>
    %50 = tpu.matmul %48, %49, %cst_27 {dimension_numbers = #tpu.dot_dimension_numbers<[1], [0], [0], [1], [0, 0, 1, 1], [], []>} : vector<1x128xbf16>, vector<128x128xbf16>, vector<1x128xf32> -> vector<1x128xf32>
    %cst_28 = arith.constant 0.000000e+00 : f32
    %51 = vector.broadcast %cst_28 : f32 to vector<1x128xf32>
    %52 = arith.cmpf oge, %50, %51 : vector<1x128xf32>
    %cst_29 = arith.constant 0.00999999977 : f32
    %53 = vector.broadcast %cst_29 : f32 to vector<1x128xf32>
    %54 = arith.mulf %53, %50 : vector<1x128xf32>
    %55 = arith.select %52, %50, %54 : vector<1x128xi1>, vector<1x128xf32>
    %56 = arith.truncf %55 : vector<1x128xf32> to vector<1x128xbf16>
    %c0_30 = arith.constant 0 : index
    %c0_31 = arith.constant 0 : index
    %57 = vector.load %arg4[%c0_30, %c0_31] : memref<128x128xbf16, #tpu.memory_space<vmem>>, vector<128x128xbf16>
    %cst_32 = arith.constant dense<0.000000e+00> : vector<1x128xf32>
    %58 = tpu.matmul %56, %57, %cst_32 {dimension_numbers = #tpu.dot_dimension_numbers<[1], [0], [0], [1], [0, 0, 1, 1], [], []>} : vector<1x128xbf16>, vector<128x128xbf16>, vector<1x128xf32> -> vector<1x128xf32>
    %cst_33 = arith.constant 0.000000e+00 : f32
    %59 = vector.broadcast %cst_33 : f32 to vector<1x128xf32>
    %60 = arith.cmpf oge, %58, %59 : vector<1x128xf32>
    %cst_34 = arith.constant 0.00999999977 : f32
    %61 = vector.broadcast %cst_34 : f32 to vector<1x128xf32>
    %62 = arith.mulf %61, %58 : vector<1x128xf32>
    %63 = arith.select %60, %58, %62 : vector<1x128xi1>, vector<1x128xf32>
    %64 = arith.truncf %63 : vector<1x128xf32> to vector<1x128xbf16>
    %c0_35 = arith.constant 0 : index
    %c0_36 = arith.constant 0 : index
    %65 = vector.load %arg5[%c0_35, %c0_36] : memref<128x128xbf16, #tpu.memory_space<vmem>>, vector<128x128xbf16>
    %cst_37 = arith.constant dense<0.000000e+00> : vector<1x128xf32>
    %66 = tpu.matmul %64, %65, %cst_37 {dimension_numbers = #tpu.dot_dimension_numbers<[1], [0], [0], [1], [0, 0, 1, 1], [], []>} : vector<1x128xbf16>, vector<128x128xbf16>, vector<1x128xf32> -> vector<1x128xf32>
    %c0_38 = arith.constant 0 : index
    %c0_39 = arith.constant 0 : index
    %c0_40 = arith.constant 0 : index
    %67 = vector.load %arg7[%c0_38, %c0_39, %c0_40] : memref<1x1x128xf32, #tpu.memory_space<vmem>>, vector<1x1x128xf32>
    %68 = vector.shape_cast %67 : vector<1x1x128xf32> to vector<1x128xf32>
    %69 = vector.shape_cast %66 : vector<1x128xf32> to vector<1x1x128xf32>
    tpu.vector_store %arg7[%c0_38, %c0_39, %c0_40], %69 {strides = array<i32>} : memref<1x1x128xf32, #tpu.memory_space<vmem>>, vector<1x1x128xf32>,
    %c0_41 = arith.constant 0 : index
    %c0_42 = arith.constant 0 : index
    %70 = vector.load %arg6[%c0_41, %c0_42] : memref<128x768xbf16, #tpu.memory_space<vmem>>, vector<128x768xbf16>
    %cst_43 = arith.constant dense<0.000000e+00> : vector<1x768xf32>
    %71 = tpu.matmul %48, %70, %cst_43 {dimension_numbers = #tpu.dot_dimension_numbers<[1], [0], [0], [1], [0, 0, 1, 1], [], []>} : vector<1x128xbf16>, vector<128x768xbf16>, vector<1x768xf32> -> vector<1x768xf32>
    %c0_44 = arith.constant 0 : index
    %c0_45 = arith.constant 0 : index
    %c0_46 = arith.constant 0 : index
    %72 = vector.load %arg8[%c0_44, %c0_45, %c0_46] : memref<1x1x768xf32, #tpu.memory_space<vmem>>, vector<1x1x768xf32>
    %73 = vector.shape_cast %72 : vector<1x1x768xf32> to vector<1x768xf32>
    %74 = vector.shape_cast %71 : vector<1x768xf32> to vector<1x1x768xf32>
    tpu.vector_store %arg8[%c0_44, %c0_45, %c0_46], %74 {strides = array<i32>} : memref<1x1x768xf32, #tpu.memory_space<vmem>>, vector<1x1x768xf32>,
    return
  }
  func.func @transform_0(%arg0: i32) -> (i32, i32, i32) {
    %c0_i32 = arith.constant 0 : i32
    %c0_i32_0 = arith.constant 0 : i32
    %c0_i32_1 = arith.constant 0 : i32
    return %arg0, %c0_i32, %c0_i32_0 : i32, i32, i32
  }
  func.func @transform_1(%arg0: i32) -> (i32, i32) {
    %c0_i32 = arith.constant 0 : i32
    %c0_i32_0 = arith.constant 0 : i32
    %c0_i32_1 = arith.constant 0 : i32
    return %c0_i32, %c0_i32_0 : i32, i32
  }
  func.func @transform_2(%arg0: i32) -> (i32, i32) {
    %c0_i32 = arith.constant 0 : i32
    %c0_i32_0 = arith.constant 0 : i32
    %c0_i32_1 = arith.constant 0 : i32
    return %c0_i32, %c0_i32_0 : i32, i32
  }
  func.func @transform_3(%arg0: i32) -> (i32, i32) {
    %c0_i32 = arith.constant 0 : i32
    %c0_i32_0 = arith.constant 0 : i32
    %c0_i32_1 = arith.constant 0 : i32
    return %c0_i32, %c0_i32_0 : i32, i32
  }
  func.func @transform_4(%arg0: i32) -> (i32, i32) {
    %c0_i32 = arith.constant 0 : i32
    %c0_i32_0 = arith.constant 0 : i32
    %c0_i32_1 = arith.constant 0 : i32
    return %c0_i32, %c0_i32_0 : i32, i32
  }
  func.func @transform_5(%arg0: i32) -> (i32, i32) {
    %c0_i32 = arith.constant 0 : i32
    %c0_i32_0 = arith.constant 0 : i32
    %c0_i32_1 = arith.constant 0 : i32
    return %c0_i32, %c0_i32_0 : i32, i32
  }
  func.func @transform_6(%arg0: i32) -> (i32, i32, i32) {
    %c0_i32 = arith.constant 0 : i32
    %c0_i32_0 = arith.constant 0 : i32
    %c0_i32_1 = arith.constant 0 : i32
    return %arg0, %c0_i32, %c0_i32_0 : i32, i32, i32
  }
  func.func @transform_7(%arg0: i32) -> (i32, i32, i32) {
    %c0_i32 = arith.constant 0 : i32
    %c0_i32_0 = arith.constant 0 : i32
    %c0_i32_1 = arith.constant 0 : i32
    return %arg0, %c0_i32, %c0_i32_0 : i32, i32, i32
  }
}

</mosaic_0001>

<bundles_post_ra>
// kernel: network_forward.1
= control target key start
LH: loop header
LB: loop body
LE: loop exit
PB: predicated region body
PF: predicated region fallthrough
CT: control target
= control target key end

     0   :  { %s1943_s24 = smov 0   ;;  %s2447_s0 = inlined_call_operand.vmem [shape: bf16[2,256,32], index: 0, kind: input, shape index: {}]   ;;  %s2448_s1 = inlined_call_operand.vmem [shape: bf16[32,128], index: 1, kind: input, shape index: {}]   ;;  %s2449_s2 = inlined_call_operand.vmem [shape: bf16[128,128], index: 2, kind: input, shape index: {}]   ;;  %s2450_s3 = inlined_call_operand.vmem [shape: bf16[128,128], index: 3, kind: input, shape index: {}]   ;;  %s2451_s4 = inlined_call_operand.vmem [shape: bf16[128,128], index: 4, kind: input, shape index: {}]   ;;  %s2452_s5 = inlined_call_operand.vmem [shape: bf16[128,768], index: 5, kind: input, shape index: {}]   ;;  %s2453_s6 = inlined_call_operand.vmem [shape: f32[2,1,128], index: 6, kind: output, shape index: {0}]   ;;  %s2454_s7 = inlined_call_operand.vmem [shape: f32[2,1,768], index: 7, kind: output, shape index: {1}]  }
   0x1 LB: > { %s1384_s25 = sadd.s32 4294967295, %s1901_s24   ;;  %p1388_p0 = scmp.ge.s32.totalorder %s1901_s24, 1  ;;  %s1901_s24 = sphi %s1943_s24, %s18_s24  }
   0x2   : > { %p240_p1 = scmp.lt.s32.totalorder %s1901_s24, 3 }
   0x4   : > { %p241_p2 = pnand %p1388_p0, %p240_p1 }
   0x5   : > { %p274_p3 = scmp.lt.s32.totalorder (!%p241_p2), %s1384_s25, 1 }
   0x6   : > { %244 = sbr.rel (%p241_p2) target bundleno = 662 (0x296), region = 44 }
   0xb   : > { %v1795_v0 = vld [vmem:[%s2448_s1 + $0x8] sm:$0xff]  ;;  %v1794_v1 = vld [vmem:[%s2448_s1] sm:$0xff]  ;;  %s2456_s25 = smov (!%p274_p3, %s1384_s25), 1  ;;  %vm331_vm0 = vcmask 261120   ;;  %v1819_v24 = vld [vmem:[%s2449_s2 + $0x38] sm:$0xff]  ;;  %vm1290_vm2 = vcmask 1040384  }
   0xc   : > { %350 = vmatpush.bf16.msra.mxu0 %v1795_v0  ;;  %1884 = vmatpush.bf16.msra.mxu1 %v1795_v0  ;;  %s1793_s30 = sshll.u32 %s2456_s25, 7  ;;  %v1818_v25 = vld [vmem:[%s2449_s2 + $0x30] sm:$0xff]  ;;  %v1817_v30 = vld [vmem:[%s2449_s2 + $0x28] sm:$0xff]  ;;  %v1816_v31 = vld [vmem:[%s2449_s2 + $0x20] sm:$0xff]  ;;  %vm1292_vm4 = vcmask 1041408   ;;  %s281_s22 = scalar_lea.vmem %s2453_s6, %s2456_s25  ;;  %vm1294_vm5 = vcmask 1043459  }
   0xd   : > { %534 = vmatpush.bf16.msra.mxu2 %v1795_v0  ;;  %626 = vmatpush.bf16.msra.mxu3 %v1795_v0  ;;  %s1963_s10 = scalar_lea.vmem %s2447_s0, %s1793_s30  ;;  %v1769_v32 = vld [vmem:[%s2452_s5 + $0x150] sm:$0xf]  ;;  %v1881_v33 = vld [vmem:[%s2452_s5 + $0x164] sm:$0xf0]  ;;  %v1815_v41 = vld [vmem:[%s2449_s2 + $0x18] sm:$0xff]  ;;  %s1886_s23 = smul.u32 6, %s2456_s25 }
   0xe   : > { %v1796_v2 = vld [vmem:[%s1963_s10] sm:$0xff]  ;;  %v1799_v3 = vld [vmem:[%s1963_s10 + $0x18] sm:$0xff]  ;;  %v1797_v6 = vld [vmem:[%s1963_s10 + $0x8] sm:$0xff]  ;;  %v1770_v34 = vor.u32 %v1881_v33, %v1769_v32  ;;  %vm1296_vm6 = vcmask 1044483   ;;  %vm1298_vm7 = vcmask 1042432  }
   0xf   : > { %v1804_v4 = vld [vmem:[%s1963_s10 + $0x40] sm:$0xff]  ;;  %v1805_v8 = vld [vmem:[%s1963_s10 + $0x48] sm:$0xff]  ;;  %v1798_v10 = vld [vmem:[%s1963_s10 + $0x10] sm:$0xff]  ;;  %s285_s28 = scalar_lea.vmem %s2454_s7, %s1886_s23 }
  0x10   : > { %351 = vmatpush.bf16.msra.mxu0 %v1794_v1  ;;  %1885 = vmatpush.bf16.msra.mxu1 %v1794_v1  ;;  %v1808_v5 = vld [vmem:[%s1963_s10 + $0x60] sm:$0xff]  ;;  %v1809_v9 = vld [vmem:[%s1963_s10 + $0x68] sm:$0xff]  ;;  %v1806_v12 = vld [vmem:[%s1963_s10 + $0x50] sm:$0xff] }
  0x11   : > { %535 = vmatpush.bf16.msra.mxu2 %v1794_v1  ;;  %627 = vmatpush.bf16.msra.mxu3 %v1794_v1  ;;  %v1800_v7 = vld [vmem:[%s1963_s10 + $0x20] sm:$0xff]  ;;  %v1801_v11 = vld [vmem:[%s1963_s10 + $0x28] sm:$0xff]  ;;  %v1810_v13 = vld [vmem:[%s1963_s10 + $0x70] sm:$0xff] }
  0x12   : > { %v1802_v14 = vld [vmem:[%s1963_s10 + $0x30] sm:$0xff]  ;;  %v1807_v15 = vld [vmem:[%s1963_s10 + $0x58] sm:$0xff]  ;;  %v1745_v42 = vld [vmem:[%s2452_s5 + $0x120] sm:$0xf] }
  0x13   : > { %1415 = vmatmul.msk.bf16.vlgmr.msra.gmra.mxu0 %vm331_vm0, %v1796_v2  ;;  %1418 = vmatmul.msk.bf16.vlgmr.msra.gmra.mxu1 %vm331_vm0, %v1799_v3  ;;  %v1811_v16 = vld [vmem:[%s1963_s10 + $0x78] sm:$0xff]  ;;  %v1814_v47 = vld [vmem:[%s2449_s2 + $0x10] sm:$0xff]  ;;  %v1869_v49 = vld [vmem:[%s2452_s5 + $0x104] sm:$0xf0] }
  0x14   : > { %442 = vmatpush.bf16.msrb.mxu1 %v1795_v0  ;;  %1471 = vmatmul.msk.bf16.vlgmr.msra.gmra.mxu2 %vm331_vm0, %v1804_v4  ;;  %v1803_v17 = vld [vmem:[%s1963_s10 + $0x38] sm:$0xff]  ;;  %v1721_v48 = vld [vmem:[%s2452_s5 + $0xf0] sm:$0xf]  ;;  %v1813_v57 = vld [vmem:[%s2449_s2 + $0x8] sm:$0xff] }
  0x15   : > { %1499 = vmatmul.msk.bf16.vlgmr.msra.gmra.mxu3 %vm331_vm0, %v1808_v5  ;;  %737 = vmatpush.bf16.msrb.mxu0 %v1819_v24  ;;  %v1875_v43 = vld [vmem:[%s2452_s5 + $0x134] sm:$0xf0]  ;;  %v1722_v50 = vor.u32 %v1869_v49, %v1721_v48  ;;  %v1697_v58 = vld [vmem:[%s2452_s5 + $0xc0] sm:$0xf]  ;;  %v1673_v0 = vld [vmem:[%s2452_s5 + $0x90] sm:$0xf] }
  0x16   : > { %1201 = vmatpush.bf16.msrb.mxu3 %v1770_v34  ;;  %v1746_v44 = vor.u32 %v1875_v43, %v1745_v42  ;;  %v1863_v59 = vld [vmem:[%s2452_s5 + $0xd4] sm:$0xf0]  ;;  %v1812_v63 = vld [vmem:[%s2449_s2] sm:$0xff]  ;;  %v1878_v3 = vld [vmem:[%s2452_s5 + $0x154] sm:$0xf] }
  0x17   : > { %v1698_v60 = vor.u32 %v1863_v59, %v1697_v58  ;;  %v1771_v4 = vld [vmem:[%s2452_s5 + $0x168] sm:$0xf0] }
  0x18   : > { %443 = vmatpush.bf16.msrb.mxu1 %v1794_v1  ;;  %v1857_v1 = vld [vmem:[%s2452_s5 + $0xa4] sm:$0xf0] }
  0x19   : > { %738 = vmatpush.bf16.msrb.mxu0 %v1818_v25  ;;  %v1674_v2 = vor.u32 %v1857_v1, %v1673_v0 }
  0x1a   : > { %1202 = vmatpush.bf16.msrb.mxu3 %v1746_v44  ;;  %v1601_v44 = vld [vmem:[%s2452_s5] sm:$0xf] }
  0x1d   : > { %739 = vmatpush.bf16.msrb.mxu0 %v1817_v30  ;;  %v1845_v30 = vld [vmem:[%s2452_s5 + $0x44] sm:$0xf0] }
  0x1e   : > { %1203 = vmatpush.bf16.msrb.mxu3 %v1722_v50 }
  0x21   : > { %740 = vmatpush.bf16.msrb.mxu0 %v1816_v31  ;;  %v1866_v31 = vld [vmem:[%s2452_s5 + $0xf4] sm:$0xf] }
  0x22   : > { %1204 = vmatpush.bf16.msrb.mxu3 %v1698_v60 }
  0x23   : > { %1416 = vmatmul.msk.bf16.gmra.mxu0 %vm331_vm0, %v1797_v6  ;;  %1443 = vmatmul.msk.bf16.vlgmr.msrb.gmra.mxu1 %vm331_vm0, %v1800_v7  ;;  %v1774_v7 = vor.u32 %v1878_v3, %v1771_v4  ;;  %v1848_v4 = vld [vmem:[%s2452_s5 + $0x64] sm:$0xf] }
  0x24   : > { %1472 = vmatmul.msk.bf16.gmra.mxu2 %vm331_vm0, %v1805_v8 }
  0x25   : > { %1500 = vmatmul.msk.bf16.gmra.mxu3 %vm331_vm0, %v1809_v9  ;;  %741 = vmatpush.bf16.msrb.mxu0 %v1815_v41 }
  0x26   : > { %1205 = vmatpush.bf16.msrb.mxu3 %v1674_v2 }
  0x29   : > { %742 = vmatpush.bf16.msrb.mxu0 %v1814_v47  ;;  %v1883_v47 = vld [vmem:[%s2452_s5 + $0x174] sm:$0xf0] }
  0x2d   : > { %743 = vmatpush.bf16.msrb.mxu0 %v1813_v57 }
  0x31   : > { %744 = vmatpush.bf16.msrb.mxu0 %v1812_v63 }
  0x33   : > { %1417 = vmatmul.msk.bf16.gmra.mxu0 %vm331_vm0, %v1798_v10  ;;  %1444 = vmatmul.msk.bf16.gmra.mxu1 %vm331_vm0, %v1801_v11 }
  0x34   : > { %1473 = vmatmul.msk.bf16.gmra.mxu2 %vm331_vm0, %v1806_v12  ;;  %v1649_v12 = vld [vmem:[%s2452_s5 + $0x60] sm:$0xf] }
  0x35   : > { %1501 = vmatmul.msk.bf16.gmra.mxu3 %vm331_vm0, %v1810_v13  ;;  %1214 = vmatpush.bf16.msra.mxu0 %v1774_v7  ;;  %v1851_v13 = vld [vmem:[%s2452_s5 + $0x74] sm:$0xf0] }
  0x43   : > { %1445 = vmatmul.msk.bf16.gmra.mxu1 %vm331_vm0, %v1802_v14  ;;  %v1650_v14 = vor.u32 %v1851_v13, %v1649_v12 }
  0x44   : > { %1474 = vmatmul.msk.bf16.gmra.mxu2 %vm331_vm0, %v1807_v15  ;;  %v1872_v15 = vld [vmem:[%s2452_s5 + $0x124] sm:$0xf] }
  0x45   : > { %1502 = vmatmul.msk.bf16.gmra.mxu3 %vm331_vm0, %v1811_v16  ;;  %v1747_v16 = vld [vmem:[%s2452_s5 + $0x138] sm:$0xf0] }
  0x46   : > { %1206 = vmatpush.bf16.msrb.mxu3 %v1650_v14 }
  0x53   : > { %1446 = vmatmul.msk.bf16.gmra.mxu1 %vm331_vm0, %v1803_v17 }
  0x90   : > { %v353_v18 = vpop.f32.mrf.mxu0  ;;  %v1997_v19 = vpop.f32.mrf.mxu1 }
  0x91   : > { %v373_v39 = vmax.f32 %v353_v18, 0.0  ;;  %v379_v17 = vmax.f32 %v1997_v19, 0.0 }
  0x97   : > { %v1999_v20 = vpop.f32.mrf.mxu2 }
  0x98   : > { %v2001_v21 = vpop.f32.mrf.mxu3  ;;  %v355_v22 = vpop.f32.mrf.mxu0 }
  0x99   : > { %v2003_v23 = vpop.f32.mrf.mxu1  ;;  %v374_v40 = vmax.f32 %v355_v22, 0.0  ;;  %v1750_v22 = vor.u32 %v1872_v15, %v1747_v16 }
  0x9a   : > { %v380_v24 = vmax.f32 %v2003_v23, 0.0  ;;  %v1723_v23 = vld [vmem:[%s2452_s5 + $0x108] sm:$0xf0] }
  0x9b   : > { %v381_v45 = vadd.f32 %v374_v40, %v373_v39  ;;  %1215 = vmatpush.bf16.msra.mxu0 %v1750_v22  ;;  %v557_v39 = vmax.f32 %v1999_v20, 0.0  ;;  %v649_v40 = vmax.f32 %v2001_v21, 0.0  ;;  %v1860_v20 = vld [vmem:[%s2452_s5 + $0xc4] sm:$0xf]  ;;  %v1699_v21 = vld [vmem:[%s2452_s5 + $0xd8] sm:$0xf0] }
  0x9f   : > { %v2011_v26 = vpop.f32.mrf.mxu2 }
  0xa0   : > { %v2013_v27 = vpop.f32.mrf.mxu3  ;;  %v358_v28 = vpop.f32.mrf.mxu0  ;;  %v558_v42 = vmax.f32 %v2011_v26, 0.0  ;;  %v1785_v26 = vld [vmem:[%s2452_s5 + $0x160] sm:$0xf] }
  0xa1   : > { %v2015_v29 = vpop.f32.mrf.mxu1  ;;  %v375_v46 = vmax.f32 %v358_v28, 0.0  ;;  %v1625_v28 = vld [vmem:[%s2452_s5 + $0x30] sm:$0xf]  ;;  %v650_v43 = vmax.f32 %v2013_v27, 0.0  ;;  %v1702_v27 = vor.u32 %v1860_v20, %v1699_v21  ;;  %v1786_v49 = vor.u32 %v1883_v47, %v1785_v26  ;;  %v1603_v20 = vld [vmem:[%s2452_s5 + $0x18] sm:$0xf0] }
  0xa2   : > { %v1626_v19 = vor.u32 %v1845_v30, %v1625_v28  ;;  %v565_v57 = vadd.f32 %v558_v42, %v557_v39  ;;  %v465_v15 = vmax.f32 %v2015_v29, 0.0  ;;  %v1689_v47 = vld [vmem:[%s2452_s5 + $0xa0] sm:$0xf] }
  0xa3   : > { %v382_v55 = vadd.f32 %v381_v45, %v375_v46  ;;  %v1839_v45 = vld [vmem:[%s2452_s5 + $0x14] sm:$0xf0]  ;;  %v657_v50 = vadd.f32 %v650_v43, %v649_v40 }
  0xa4   : > { %1207 = vmatpush.bf16.msrb.mxu3 %v1626_v19  ;;  %v1602_v46 = vor.u32 %v1839_v45, %v1601_v44  ;;  %v1865_v19 = vld [vmem:[%s2452_s5 + $0xe4] sm:$0xf0] }
  0xa7   : > { %v2029_v35 = vpop.f32.mrf.mxu2 }
  0xa8   : > { %v2031_v36 = vpop.f32.mrf.mxu3  ;;  %v360_v37 = vpop.f32.mrf.mxu0  ;;  %v559_v48 = vmax.f32 %v2029_v35, 0.0  ;;  %1208 = vmatpush.bf16.msrb.mxu3 %v1602_v46  ;;  %v1761_v35 = vld [vmem:[%s2452_s5 + $0x130] sm:$0xf]  ;;  %v1836_v46 = vld [vmem:[%s2452_s5 + $0x4] sm:$0xf] }
  0xa9   : > { %v2033_v38 = vpop.f32.mrf.mxu1  ;;  %v376_v56 = vmax.f32 %v360_v37, 0.0  ;;  %v1726_v37 = vor.u32 %v1866_v31, %v1723_v23 }
  0xaa   : > { %v566_v0 = vadd.f32 %v565_v57, %v559_v48  ;;  %v466_v7 = vmax.f32 %v2033_v38, 0.0 }
  0xab   : > { %v383_v61 = vadd.f32 %v382_v55, %v376_v56  ;;  %1216 = vmatpush.bf16.msra.mxu0 %v1726_v37  ;;  %v1854_v55 = vld [vmem:[%s2452_s5 + $0x94] sm:$0xf]  ;;  %v1675_v56 = vld [vmem:[%s2452_s5 + $0xa8] sm:$0xf0] }
  0xac   : > { %1253 = vmatpush.bf16.msra.mxu3 %v1786_v49  ;;  %v1678_v59 = vor.u32 %v1854_v55, %v1675_v56  ;;  %v473_v28 = vadd.f32 %v466_v7, %v465_v15  ;;  %v1665_v55 = vld [vmem:[%s2452_s5 + $0x70] sm:$0xf]  ;;  %v1853_v56 = vld [vmem:[%s2452_s5 + $0x84] sm:$0xf0] }
  0xaf   : > { %v2053_v51 = vpop.f32.mrf.mxu2  ;;  %1217 = vmatpush.bf16.msra.mxu0 %v1702_v27  ;;  %v1606_v27 = vor.u32 %v1836_v46, %v1603_v20  ;;  %v1826_v46 = vld [vmem:[%s2450_s3 + $0x30] sm:$0xff] }
  0xb0   : > { %v2055_v52 = vpop.f32.mrf.mxu3  ;;  %v363_v53 = vpop.f32.mrf.mxu0  ;;  %v560_v58 = vmax.f32 %v2053_v51, 0.0 }
  0xb1   : > { %v2057_v54 = vpop.f32.mrf.mxu1  ;;  %v377_v62 = vmax.f32 %v363_v53, 0.0  ;;  %v651_v53 = vmax.f32 %v2031_v36, 0.0  ;;  %v1877_v36 = vld [vmem:[%s2452_s5 + $0x144] sm:$0xf0]  ;;  %v652_v60 = vmax.f32 %v2055_v52, 0.0 }
  0xb2   : > { %v1762_v63 = vor.u32 %v1877_v36, %v1761_v35  ;;  %v1651_v52 = vld [vmem:[%s2452_s5 + $0x78] sm:$0xf0]  ;;  %v467_v38 = vmax.f32 %v2057_v54, 0.0  ;;  %v1713_v54 = vld [vmem:[%s2452_s5 + $0xd0] sm:$0xf]  ;;  %v1666_v35 = vor.u32 %v1853_v56, %v1665_v55 }
  0xb3   : > { %v384_v10 = vadd.f32 %v383_v61, %v377_v62  ;;  %v658_v51 = vadd.f32 %v657_v50, %v651_v53  ;;  %1218 = vmatpush.bf16.msra.mxu0 %v1678_v59  ;;  %v1714_v37 = vor.u32 %v1865_v19, %v1713_v54  ;;  %v1667_v55 = vld [vmem:[%s2452_s5 + $0x88] sm:$0xf0]  ;;  %v1823_v56 = vld [vmem:[%s2450_s3 + $0x18] sm:$0xff] }
  0xb4   : > { %1254 = vmatpush.bf16.msra.mxu3 %v1762_v63  ;;  %v474_v39 = vadd.f32 %v473_v28, %v467_v38  ;;  %v1641_v63 = vld [vmem:[%s2452_s5 + $0x40] sm:$0xf] }
  0xb5   : > { %v659_v12 = vadd.f32 %v658_v51, %v652_v60 }
  0xb7   : > { %v2083_v5 = vpop.f32.mrf.mxu2 }
  0xb8   : > { %v2085_v6 = vpop.f32.mrf.mxu3  ;;  %v365_v8 = vpop.f32.mrf.mxu0  ;;  %v561_v1 = vmax.f32 %v2083_v5, 0.0  ;;  %v1654_v5 = vor.u32 %v1848_v4, %v1651_v52 }
  0xb9   : > { %v2087_v9 = vpop.f32.mrf.mxu1  ;;  %v378_v11 = vmax.f32 %v365_v8, 0.0  ;;  %v653_v3 = vmax.f32 %v2085_v6, 0.0  ;;  %v567_v8 = vadd.f32 %v566_v0, %v560_v58  ;;  %v1737_v6 = vld [vmem:[%s2452_s5 + $0x100] sm:$0xf]  ;;  %v1847_v0 = vld [vmem:[%s2452_s5 + $0x54] sm:$0xf0] }
  0xba   : > { %1219 = vmatpush.bf16.msra.mxu0 %v1654_v5  ;;  %v468_v30 = vmax.f32 %v2087_v9, 0.0 }
  0xbb   : > { %v385_v18 = vadd.f32 %v384_v10, %v378_v11  ;;  %v1871_v11 = vld [vmem:[%s2452_s5 + $0x114] sm:$0xf0]  ;;  %v568_v16 = vadd.f32 %v567_v8, %v561_v1  ;;  %v1841_v8 = vld [vmem:[%s2452_s5 + $0x24] sm:$0xf0] }
  0xbc   : > { %v1738_v14 = vor.u32 %v1871_v11, %v1737_v6  ;;  %v475_v21 = vadd.f32 %v474_v39, %v468_v30 }
  0xbd   : > { %v386_v25 = vadd.f32 %v385_v18, %v379_v17  ;;  %v660_v18 = vadd.f32 %v659_v12, %v653_v3  ;;  %v1642_v3 = vor.u32 %v1847_v0, %v1641_v63  ;;  %v1777_v63 = vld [vmem:[%s2452_s5 + $0x158] sm:$0xf]  ;;  %v1882_v0 = vld [vmem:[%s2452_s5 + $0x16c] sm:$0xf0] }
  0xbe   : > { %1255 = vmatpush.bf16.msra.mxu3 %v1738_v14 }
  0xbf   : > { %v2115_v32 = vadd.f32 %v386_v25, %v380_v24  ;;  %v2117_v33 = vpop.f32.mrf.mxu2  ;;  %v1842_v24 = vld [vmem:[%s2452_s5 + $0x34] sm:$0xf]  ;;  %v1627_v25 = vld [vmem:[%s2452_s5 + $0x48] sm:$0xf0] }
  0xc0   : > { %v2119_v34 = vpop.f32.mrf.mxu3  ;;  %v562_v10 = vmax.f32 %v2117_v33, 0.0  ;;  %v1630_v29 = vor.u32 %v1842_v24, %v1627_v25 }
  0xc1   : > { %v2123_v41 = vpop.f32.mrf.mxu1  ;;  %v654_v13 = vmax.f32 %v2119_v34, 0.0  ;;  %v388_v48 = vrot.slane %v2115_v32, 4 }
  0xc2   : > { %v569_v31 = vadd.f32 %v568_v16, %v562_v10  ;;  %v469_v44 = vmax.f32 %v2123_v41, 0.0  ;;  %1220 = vmatpush.bf16.msra.mxu0 %v1630_v29  ;;  %1256 = vmatpush.bf16.msra.mxu3 %v1714_v37  ;;  %v1859_v41 = vld [vmem:[%s2452_s5 + $0xb4] sm:$0xf0] }
  0xc3   : > { %v661_v23 = vadd.f32 %v660_v18, %v654_v13  ;;  %v1690_v53 = vor.u32 %v1859_v41, %v1689_v47  ;;  %v389_v36 = vadd.f32 %v388_v48, %v2115_v32  ;;  %v1617_v32 = vld [vmem:[%s2452_s5 + $0x10] sm:$0xf]  ;;  %v1856_v41 = vld [vmem:[%s2452_s5 + $0xa4] sm:$0xf]  ;;  %v1691_v48 = vld [vmem:[%s2452_s5 + $0xb8] sm:$0xf0] }
  0xc4   : > { %v476_v57 = vadd.f32 %v475_v21, %v469_v44  ;;  %v1618_v6 = vor.u32 %v1841_v8, %v1617_v32  ;;  %v1868_v44 = vld [vmem:[%s2452_s5 + $0x104] sm:$0xf]  ;;  %v1862_v21 = vld [vmem:[%s2452_s5 + $0xd4] sm:$0xf]  ;;  %v1870_v32 = vld [vmem:[%s2452_s5 + $0x10c] sm:$0xf0] }
  0xc5   : > { %v390_v4 = vrot.slane %v389_v36, 2 }
  0xc6   : > { %1221 = vmatpush.bf16.msra.mxu0 %v1606_v27  ;;  %1257 = vmatpush.bf16.msra.mxu3 %v1690_v53  ;;  %v1825_v27 = vld [vmem:[%s2450_s3 + $0x28] sm:$0xff]  ;;  %v1850_v53 = vld [vmem:[%s2452_s5 + $0x74] sm:$0xf] }
  0xc7   : > { %v552_v61 = vpop.f32.mrf.mxu2  ;;  %v391_v11 = vadd.f32 %v390_v4, %v389_v36  ;;  %v1876_v4 = vld [vmem:[%s2452_s5 + $0x13c] sm:$0xf0] }
  0xc8   : > { %v644_v62 = vpop.f32.mrf.mxu3  ;;  %v563_v17 = vmax.f32 %v552_v61, 0.0 }
  0xc9   : > { %v2162_v2 = vpop.f32.mrf.mxu1  ;;  %v655_v22 = vmax.f32 %v644_v62, 0.0  ;;  %v392_v38 = vrot.slane %v391_v11, 1 }
  0xca   : > { %v570_v40 = vadd.f32 %v569_v31, %v563_v17  ;;  %v470_v49 = vmax.f32 %v2162_v2, 0.0  ;;  %1258 = vmatpush.bf16.msra.mxu3 %v1666_v35  ;;  %v1822_v35 = vld [vmem:[%s2450_s3 + $0x10] sm:$0xff] }
  0xcb   : > { %v662_v45 = vadd.f32 %v661_v23, %v655_v22  ;;  %v393_v25 = vadd.f32 %v392_v38, %v391_v11  ;;  %v1880_v23 = vld [vmem:[%s2452_s5 + $0x164] sm:$0xf]  ;;  %v1681_v11 = vld [vmem:[%s2452_s5 + $0x98] sm:$0xf] }
  0xcc   : > { %v477_v60 = vadd.f32 %v476_v57, %v470_v49  ;;  %v1824_v49 = vld [vmem:[%s2450_s3 + $0x20] sm:$0xff]  ;;  %v1670_v57 = vor.u32 %v1850_v53, %v1667_v55 }
  0xcd   : > { %v1755_v53 = vld [vmem:[%s2452_s5 + $0x140] sm:$0xf0] }
  0xce   : > { %1259 = vmatpush.bf16.msra.mxu3 %v1642_v3  ;;  %v1753_v3 = vld [vmem:[%s2452_s5 + $0x128] sm:$0xf] }
  0xcf   : > { %v554_v33 = vpop.f32.mrf.mxu2 }
  0xd0   : > { %v646_v34 = vpop.f32.mrf.mxu3  ;;  %v564_v42 = vmax.f32 %v554_v33, 0.0  ;;  %v1787_v33 = vld [vmem:[%s2452_s5 + $0x178] sm:$0xf0] }
  0xd1   : > { %v656_v43 = vmax.f32 %v646_v34, 0.0  ;;  %v460_v9 = vpop.f32.mrf.mxu1  ;;  %v1790_v37 = vor.u32 %v1880_v23, %v1787_v33  ;;  %v1835_v23 = vld [vmem:[%s2451_s4 + $0x38] sm:$0xff]  ;;  %v1834_v33 = vld [vmem:[%s2451_s4 + $0x30] sm:$0xff] }
  0xd2   : > { %v571_v26 = vadd.f32 %v570_v40, %v564_v42  ;;  %v471_v59 = vmax.f32 %v460_v9, 0.0  ;;  %1260 = vmatpush.bf16.msra.mxu3 %v1618_v6  ;;  %v1874_v40 = vld [vmem:[%s2452_s5 + $0x134] sm:$0xf]  ;;  %v1763_v42 = vld [vmem:[%s2452_s5 + $0x148] sm:$0xf0]  ;;  %899 = vmatpush.bf16.msrb.mxu2 %v1835_v23 }
  0xd3   : > { %v663_v50 = vadd.f32 %v662_v45, %v656_v43  ;;  %v1827_v43 = vld [vmem:[%s2450_s3 + $0x38] sm:$0xff]  ;;  %v1766_v9 = vor.u32 %v1874_v40, %v1763_v42 }
  0xd4   : > { %v572_v58 = vrot.slane %v571_v26, 4  ;;  %v478_v2 = vadd.f32 %v477_v60, %v471_v59  ;;  %v1739_v45 = vld [vmem:[%s2452_s5 + $0x118] sm:$0xf0]  ;;  %818 = vmatpush.bf16.msra.mxu1 %v1827_v43  ;;  %v1838_v60 = vld [vmem:[%s2452_s5 + $0x14] sm:$0xf]  ;;  %v1832_v43 = vld [vmem:[%s2451_s4 + $0x20] sm:$0xff] }
  0xd5   : > { %v664_v61 = vrot.slane %v663_v50, 4  ;;  %v1742_v20 = vor.u32 %v1868_v44, %v1739_v45  ;;  %v1643_v59 = vld [vmem:[%s2452_s5 + $0x58] sm:$0xf0] }
  0xd6   : > { %v573_v1 = vadd.f32 %v572_v58, %v571_v26  ;;  %v1715_v26 = vld [vmem:[%s2452_s5 + $0xe8] sm:$0xf0]  ;;  %v1844_v58 = vld [vmem:[%s2452_s5 + $0x44] sm:$0xf]  ;;  %900 = vmatpush.bf16.msrb.mxu2 %v1834_v33  ;;  %v1831_v45 = vld [vmem:[%s2451_s4 + $0x18] sm:$0xff] }
  0xd7   : > { %v665_v52 = vadd.f32 %v664_v61, %v663_v50  ;;  %v1718_v47 = vor.u32 %v1862_v21, %v1715_v26  ;;  %v1694_v50 = vor.u32 %v1856_v41, %v1691_v48  ;;  %v1646_v36 = vor.u32 %v1844_v58, %v1643_v59  ;;  %v1619_v61 = vld [vmem:[%s2452_s5 + $0x28] sm:$0xf0]  ;;  %v1779_v41 = vld [vmem:[%s2452_s5 + $0x170] sm:$0xf0]  ;;  %v1828_v48 = vld [vmem:[%s2451_s4] sm:$0xff] }
  0xd8   : > { %v574_v10 = vrot.slane %v573_v1, 2  ;;  %819 = vmatpush.bf16.msra.mxu1 %v1826_v46  ;;  %v1829_v26 = vld [vmem:[%s2451_s4 + $0x8] sm:$0xff]  ;;  %v1731_v58 = vld [vmem:[%s2452_s5 + $0x110] sm:$0xf0] }
  0xd9   : > { %v462_v62 = vpop.f32.mrf.mxu1  ;;  %v666_v12 = vrot.slane %v665_v52, 2 }
  0xda   : > { %v472_v51 = vmax.f32 %v462_v62, 0.0  ;;  %v575_v14 = vadd.f32 %v574_v10, %v573_v1  ;;  %v1821_v62 = vld [vmem:[%s2450_s3 + $0x8] sm:$0xff]  ;;  %v1622_v1 = vor.u32 %v1838_v60, %v1619_v61  ;;  %v1855_v61 = vld [vmem:[%s2452_s5 + $0x9c] sm:$0xf] }
  0xdb   : > { %v667_v16 = vadd.f32 %v666_v12, %v665_v52  ;;  %v1754_v52 = vor.u32 %v1876_v4, %v1753_v3  ;;  %v1705_v10 = vld [vmem:[%s2452_s5 + $0xc8] sm:$0xf]  ;;  %v1858_v12 = vld [vmem:[%s2452_s5 + $0xac] sm:$0xf0]  ;;  %v1635_v3 = vld [vmem:[%s2452_s5 + $0x50] sm:$0xf0] }
  0xdc   : > { %v479_v7 = vadd.f32 %v478_v2, %v472_v51  ;;  %v576_v18 = vrot.slane %v575_v14, 1  ;;  %820 = vmatpush.bf16.msra.mxu1 %v1825_v27  ;;  %v1820_v2 = vld [vmem:[%s2450_s3] sm:$0xff]  ;;  %v1778_v51 = vor.u32 %v1882_v0, %v1777_v63  ;;  %v1849_v0 = vld [vmem:[%s2452_s5 + $0x6c] sm:$0xf] }
  0xdd   : > { %v668_v24 = vrot.slane %v667_v16, 1 }
  0xde   : > { %v480_v5 = vrot.slane %v479_v7, 4  ;;  %v577_v30 = vadd.f32 %v576_v18, %v575_v14  ;;  %v1657_v14 = vld [vmem:[%s2452_s5 + $0x68] sm:$0xf] }
  0xdf   : > { %v669_v29 = vadd.f32 %v668_v24, %v667_v16  ;;  %v1633_v16 = vld [vmem:[%s2452_s5 + $0x38] sm:$0xf]  ;;  %v1840_v24 = vld [vmem:[%s2452_s5 + $0x1c] sm:$0xf0] }
  0xe0   : > { %v481_v13 = vadd.f32 %v480_v5, %v479_v7  ;;  %821 = vmatpush.bf16.msra.mxu1 %v1824_v49  ;;  %v1729_v7 = vld [vmem:[%s2452_s5 + $0xf8] sm:$0xf]  ;;  %v1864_v5 = vld [vmem:[%s2452_s5 + $0xdc] sm:$0xf0] }
  0xe1   : > { %v1730_v8 = vor.u32 %v1870_v32, %v1729_v7  ;;  %v1706_v6 = vor.u32 %v1864_v5, %v1705_v10  ;;  %v1611_v7 = vld [vmem:[%s2452_s5 + $0x20] sm:$0xf0] }
  0xe2   : > { %v482_v15 = vrot.slane %v481_v13, 2 }
  0xe4   : > { %v483_v17 = vadd.f32 %v482_v15, %v481_v13  ;;  %822 = vmatpush.bf16.msra.mxu1 %v1823_v56  ;;  %v1682_v13 = vor.u32 %v1858_v12, %v1681_v11  ;;  %v1852_v15 = vld [vmem:[%s2452_s5 + $0x7c] sm:$0xf0] }
  0xe5   : > { %v1658_v38 = vor.u32 %v1852_v15, %v1657_v14 }
  0xe6   : > { %v484_v22 = vrot.slane %v483_v17, 1 }
  0xe8   : > { %v485_v28 = vadd.f32 %v484_v22, %v483_v17  ;;  %823 = vmatpush.bf16.msra.mxu1 %v1822_v35  ;;  %v1846_v17 = vld [vmem:[%s2452_s5 + $0x4c] sm:$0xf0]  ;;  %v1609_v22 = vld [vmem:[%s2452_s5 + $0x8] sm:$0xf]  ;;  %v1861_v35 = vld [vmem:[%s2452_s5 + $0xcc] sm:$0xf] }
  0xe9   : > { %v1634_v18 = vor.u32 %v1846_v17, %v1633_v16  ;;  %v1301_v17 = vlaneseq }
  0xea   : > { %v486_v31 = vadd.f32 %v485_v28, %v393_v25  ;;  %v1610_v25 = vor.u32 %v1840_v24, %v1609_v22 }
  0xeb   : > { %vm1303_vm8 = vcmp.lt.s32.totalorder %v1301_v17, 768 }
  0xec   : > { %v578_v54 = vadd.f32 %v577_v30, %v486_v31  ;;  %824 = vmatpush.bf16.msra.mxu1 %v1821_v62  ;;  %v1683_v62 = vld [vmem:[%s2452_s5 + $0xb0] sm:$0xf0] }
  0xed   : > { %v1686_v63 = vor.u32 %v1855_v61, %v1683_v62 }
  0xee   : > { %v670_v19 = vadd.f32 %v669_v29, %v578_v54 }
  0xf0   : > { %v671_v34 = vmul.f32 0.00390625, %v670_v19  ;;  %825 = vmatpush.bf16.msra.mxu1 %v1820_v2 }
  0xf2   : > { %v2235_v39 = vpack.c.bf16 %v671_v34, %v671_v34 }
  0xf4   : > { %745 = vmatmul.bf16.vlgmr.msrb.gmra.mxu0 %v2235_v39  ;;  %1209 = vmatmul.bf16.vlgmr.msrb.gmra.mxu3 %v2235_v39 }
  0xf5   : > { %1266 = vmatpush.bf16.msrb.mxu0 %v1790_v37  ;;  %1227 = vmatpush.bf16.msrb.mxu1 %v1778_v51  ;;  %v1833_v37 = vld [vmem:[%s2451_s4 + $0x28] sm:$0xff]  ;;  %v1843_v51 = vld [vmem:[%s2452_s5 + $0x3c] sm:$0xf] }
  0xf6   : > { %901 = vmatpush.bf16.msrb.mxu2 %v1833_v37  ;;  %v1638_v4 = vor.u32 %v1843_v51, %v1635_v3 }
  0xf9   : > { %1267 = vmatpush.bf16.msrb.mxu0 %v1766_v9  ;;  %1228 = vmatpush.bf16.msrb.mxu1 %v1754_v52  ;;  %v1837_v52 = vld [vmem:[%s2452_s5 + $0xc] sm:$0xf] }
  0xfa   : > { %902 = vmatpush.bf16.msrb.mxu2 %v1832_v43  ;;  %v1614_v32 = vor.u32 %v1837_v52, %v1611_v7 }
  0xfd   : > { %1268 = vmatpush.bf16.msrb.mxu0 %v1742_v20  ;;  %1229 = vmatpush.bf16.msrb.mxu1 %v1730_v8  ;;  %v1830_v20 = vld [vmem:[%s2451_s4 + $0x10] sm:$0xff] }
  0xfe   : > { %903 = vmatpush.bf16.msrb.mxu2 %v1831_v45 }
 0x101   : > { %1269 = vmatpush.bf16.msrb.mxu0 %v1718_v47  ;;  %1230 = vmatpush.bf16.msrb.mxu1 %v1706_v6  ;;  %v1879_v47 = vld [vmem:[%s2452_s5 + $0x15c] sm:$0xf] }
 0x102   : > { %904 = vmatpush.bf16.msrb.mxu2 %v1830_v20  ;;  %v1782_v49 = vor.u32 %v1879_v47, %v1779_v41 }
 0x104   : > { %1222 = vmatmul.bf16.vlgmr.msra.gmra.mxu0 %v2235_v39  ;;  %1261 = vmatmul.bf16.vlgmr.msra.gmra.mxu3 %v2235_v39 }
 0x105   : > { %1270 = vmatpush.bf16.msrb.mxu0 %v1694_v50  ;;  %1231 = vmatpush.bf16.msrb.mxu1 %v1682_v13  ;;  %v1873_v50 = vld [vmem:[%s2452_s5 + $0x12c] sm:$0xf] }
 0x106   : > { %905 = vmatpush.bf16.msrb.mxu2 %v1829_v26  ;;  %v1758_v55 = vor.u32 %v1873_v50, %v1755_v53 }
 0x109   : > { %1271 = vmatpush.bf16.msrb.mxu0 %v1670_v57  ;;  %1232 = vmatpush.bf16.msrb.mxu1 %v1658_v38  ;;  %v1867_v57 = vld [vmem:[%s2452_s5 + $0xfc] sm:$0xf] }
 0x10a   : > { %906 = vmatpush.bf16.msrb.mxu2 %v1828_v48  ;;  %v1734_v59 = vor.u32 %v1867_v57, %v1731_v58 }
 0x10d   : > { %1272 = vmatpush.bf16.msrb.mxu0 %v1646_v36  ;;  %1233 = vmatpush.bf16.msrb.mxu1 %v1634_v18  ;;  %v1707_v36 = vld [vmem:[%s2452_s5 + $0xe0] sm:$0xf0] }
 0x10e   : > { %1240 = vmatpush.bf16.msra.mxu2 %v1782_v49  ;;  %v1710_v60 = vor.u32 %v1861_v35, %v1707_v36 }
 0x111   : > { %1273 = vmatpush.bf16.msrb.mxu0 %v1622_v1  ;;  %1234 = vmatpush.bf16.msrb.mxu1 %v1610_v25  ;;  %v1659_v1 = vld [vmem:[%s2452_s5 + $0x80] sm:$0xf0] }
 0x112   : > { %1241 = vmatpush.bf16.msra.mxu2 %v1758_v55  ;;  %v1662_v2 = vor.u32 %v1849_v0, %v1659_v1 }
 0x114   : > { %1274 = vmatmul.bf16.vlgmr.msrb.gmra.mxu0 %v2235_v39 }
 0x116   : > { %1242 = vmatpush.bf16.msra.mxu2 %v1734_v59 }
 0x11a   : > { %1243 = vmatpush.bf16.msra.mxu2 %v1710_v60 }
 0x11e   : > { %1244 = vmatpush.bf16.msra.mxu2 %v1686_v63 }
 0x122   : > { %1245 = vmatpush.bf16.msra.mxu2 %v1662_v2 }
 0x126   : > { %1246 = vmatpush.bf16.msra.mxu2 %v1638_v4 }
 0x12a   : > { %1247 = vmatpush.bf16.msra.mxu2 %v1614_v32 }
 0x171   : > { %v746_v28 = vpop.f32.mrf.mxu0 }
 0x172   : > { %vm750_vm1 = vcmp.ge.f32.partialorder %v746_v28, 0.0  ;;  %v751_v30 = vmul.f32 0.01, %v746_v28 }
 0x174   : > { %v752_v31 = vsel %vm750_vm1, %v746_v28, %v751_v30 }
 0x175   : > { %v753_v29 = vpack.c.bf16 %v752_v31, %v752_v31 }
 0x177   : > { %826 = vmatmul.bf16.vlgmr.msra.gmra.mxu1 %v753_v29  ;;  %v1210_v54 = vpop.f32.mrf.mxu3 }
 0x179   : > { %v748_v19 = vpop.f32.mrf.mxu0 }
 0x17f   : > { %v1212_v34 = vpop.f32.mrf.mxu3 }
 0x181   : > { %v1223_v40 = vpop.f32.mrf.mxu0 }
 0x182   : > { %v1285_v42 = vrot.slane %v1223_v40, 7 }
 0x184   : > { %v1291_v9 = vsel %vm1290_vm2, %v1210_v54, %v1285_v42 }
 0x187   : > { %1235 = vmatmul.bf16.vlgmr.msrb.gmra.mxu1 %v2235_v39  ;;  %v2369_v44 = vpop.f32.mrf.mxu3 }
 0x188   : > { %v1288_v22 = vrot.slane %v2369_v44, 4 }
 0x189   : > { %v1225_v46 = vpop.f32.mrf.mxu0 }
 0x18f   : > { %v1264_v21 = vpop.f32.mrf.mxu3 }
 0x191   : > { %v2380_v27 = vpop.f32.mrf.mxu0 }
 0x192   : > { %v1289_v25 = vrot.slane %v2380_v27, 3 }
 0x199   : > { %v1277_v56 = vpop.f32.mrf.mxu0 }
 0x1f4   : > { %v827_v8 = vpop.f32.mrf.mxu1 }
 0x1f5   : > { %vm831_vm3 = vcmp.ge.f32.partialorder %v827_v8, 0.0  ;;  %v832_v10 = vmul.f32 0.01, %v827_v8 }
 0x1f7   : > { %v833_v5 = vsel %vm831_vm3, %v827_v8, %v832_v10 }
 0x1f8   : > { %v834_v6 = vpack.c.bf16 %v833_v5, %v833_v5 }
 0x1fa   : > { %907 = vmatmul.bf16.vlgmr.msrb.gmra.mxu2 %v834_v6 }
 0x1fc   : > { %v829_v11 = vpop.f32.mrf.mxu1 }
 0x204   : > { %v1236_v12 = vpop.f32.mrf.mxu1 }
 0x205   : > { %v1286_v13 = vrot.slane %v1236_v12, 6 }
 0x207   : > { %v1293_v14 = vsel %vm1292_vm4, %v1291_v9, %v1286_v13 }
 0x20a   : > { %1248 = vmatmul.bf16.vlgmr.msra.gmra.mxu2 %v2235_v39 }
 0x20c   : > { %v1238_v15 = vpop.f32.mrf.mxu1 }
 0x27d   : > { %v908_v38 = vpop.f32.mrf.mxu2 }
 0x27e   : > { %912 = vst [vmem:[%s281_s22] sm:$0x1] %v908_v38 }
 0x285   : > { %v910_v16 = vpop.f32.mrf.mxu2 }
 0x28d   : > { %v1249_v18 = vpop.f32.mrf.mxu2 }
 0x28e   : > { %v1287_v24 = vrot.slane %v1249_v18, 5 }
 0x290   : > { %v1295_v39 = vsel %vm1294_vm5, %v1287_v24, %v1288_v22 }
 0x291   : > { %v1297_v28 = vsel %vm1296_vm6, %v1295_v39, %v1289_v25 }
 0x292   : > { %v1299_v30 = vsel %vm1298_vm7, %v1293_v14, %v1297_v28 }
 0x293   : > { %1305 = vst.msk [vmem:[%s285_s28] sm:$0x3f] %vm1303_vm8, %v1299_v30 }
 0x295   : > { %v1251_v31 = vpop.f32.mrf.mxu2 }
 0x296 PF: > { %s18_s24 = sadd.s32 1, %s1901_s24  }
 0x297   : > { %p15_p4 = scmp.ge.s32.totalorder %s18_s24, 4  }
 0x299   :  { %17 = sbr.rel (!%p15_p4) target bundleno = 1 (0x1), region = 89 }

</bundles_post_ra>
